<compile_context>
chip_gen: v6e
topology: v6e:2x2x1
jax: 0.10.0
libtpu: 0.0.40
codegen_flags: <defaults>
</compile_context>

<pallas_src>
import math

import jax
import jax.numpy as jnp
from jax.experimental import pallas as pl
from jax.experimental.pallas import tpu as pltpu


MATMUL_DTYPE = jnp.bfloat16   # MXU-native path; set to jnp.float32 for bit-exact math.
DEFAULT_ROW_TILE = 512        # ~85% of HBM roofline in reference tile sweeps.


def _round_up(x, m):
    return (x + m - 1) // m * m


def _vmem_cap_bytes():
    """Per-core VMEM capacity (generation-aware), with a conservative fallback."""
    try:
        return int(pltpu.get_tpu_info().vmem_capacity_bytes)
    except Exception:
        return 64 * 1024 * 1024        # v7x per-TC size: safe lower bound


def _choose_row_tile(n_rows, row_tile=DEFAULT_ROW_TILE, min_split=256):
    """Row tile that is a multiple of 8, keeps padding waste low, and yields
    >= 2 grid tiles whenever there is enough work (v7x megacore sharding)."""
    n8 = _round_up(n_rows, 8)
    if n8 <= min_split:
        return n8                                   # too small to split usefully
    n_tiles = max(2, pl.cdiv(n8, row_tile))         # >= 2 tiles for 2-TC chips
    return _round_up(pl.cdiv(n8, n_tiles), 8)


# ----------------------------- Pallas kernels ------------------------------

def _make_resident_kernel(number_layers, input_size, nonlinearity):
    """All layers' fused weights resident in VMEM (single-buffered)."""
    D = input_size
    L = number_layers

    def one_layer(layer, y, w_ref, b_ref):
        w_l = w_ref[layer]                               # (D, 3D)  [Wh | Wl | Wg]
        b_l = b_ref[layer]                               # (1, 3D)
        z = jnp.dot(y.astype(w_l.dtype), w_l,
                    preferred_element_type=jnp.float32) + b_l
        h = nonlinearity(z[:, 0 * D:1 * D])              # nonlinear path
        lin = z[:, 1 * D:2 * D]                          # linear path
        g = jax.nn.sigmoid(z[:, 2 * D:3 * D])            # transform gate
        return lin + g * (h - lin)                       # == g*h + (1-g)*lin

    def kernel(x_ref, w_ref, b_ref, o_ref):
        # x_ref: (tile, D) io_dtype ; w_ref: (L, D, 3D) ; b_ref: (L, 1, 3D) f32
        y = x_ref[...].astype(jnp.float32)
        if L <= 4:                                       # static unroll for small L
            for layer in range(L):
                y = one_layer(layer, y, w_ref, b_ref)
        else:                                            # bounded body for large L
            y = jax.lax.fori_loop(
                0, L, lambda l, acc: one_layer(l, acc, w_ref, b_ref), y)
        o_ref[...] = y.astype(o_ref.dtype)

    return kernel


def _make_streamed_kernel(input_size, nonlinearity):
    """One layer's weights per grid step (trailing "arbitrary" layer axis);
    the activation is carried across layers in a VMEM scratch accumulator."""
    D = input_size

    def kernel(x_ref, w_ref, b_ref, o_ref, acc_ref):
        layer = pl.program_id(1)

        @pl.when(layer == 0)
        def _():
            acc_ref[...] = x_ref[...].astype(jnp.float32)

        y = acc_ref[...]
        w_l = w_ref[0]                                   # (D, 3D)
        b_l = b_ref[0]                                   # (1, 3D)
        z = jnp.dot(y.astype(w_l.dtype), w_l,
                    preferred_element_type=jnp.float32) + b_l
        h = nonlinearity(z[:, 0 * D:1 * D])
        lin = z[:, 1 * D:2 * D]
        g = jax.nn.sigmoid(z[:, 2 * D:3 * D])
        acc_ref[...] = lin + g * (h - lin)

        @pl.when(layer == pl.num_programs(1) - 1)
        def _():
            o_ref[...] = acc_ref[...].astype(o_ref.dtype)

    return kernel


# ----------------------------- wrapper --------------------------------------

def highway_forward(inputs, fused_w, fused_b, *, nonlinearity=jax.nn.relu,
                    row_tile=DEFAULT_ROW_TILE, force_stream_layers=None):
    """Multi-layer highway transform. `inputs` may be any shape with feature
    size == input_size in the last dim (matches the PyTorch module contract).
    I/O stays in the input's native dtype; math is f32 with bf16 MXU matmuls."""
    orig_shape = inputs.shape
    io_dtype = inputs.dtype
    D = orig_shape[-1]
    L = fused_w.shape[0]
    assert fused_w.shape == (L, D, 3 * D) and fused_b.shape == (L, 1, 3 * D)

    x = inputs.reshape(-1, D)                    # native dtype: no extra cast pass
    N = x.shape[0]
    tile = _choose_row_tile(N, row_tile)
    Np = _round_up(N, tile)
    if Np != N:
        x = jnp.pad(x, ((0, Np - N), (0, 0)))    # padded rows sliced off below

    vmem_cap = _vmem_cap_bytes()
    vmem_limit = max(32 * 1024 * 1024, int(0.75 * vmem_cap))
    w_bytes = (L * D * 3 * D * fused_w.dtype.itemsize
               + L * 3 * D * fused_b.dtype.itemsize)
    stream_layers = (w_bytes > vmem_cap // 3) if force_stream_layers is None \
        else force_stream_layers

    if not stream_layers:
        # All layers' weights resident in VMEM, fetched once, single-buffered.
        kernel = _make_resident_kernel(L, D, nonlinearity)
        grid_spec = pltpu.PrefetchScalarGridSpec(
            num_scalar_prefetch=0,
            grid=(Np // tile,),
            in_specs=[
                pl.BlockSpec((tile, D), lambda i: (i, 0)),            # x rows: tiled
                pl.BlockSpec((L, D, 3 * D), lambda i: (0, 0, 0),      # weights: resident
                             pipeline_mode=pl.Buffered(1)),
                pl.BlockSpec((L, 1, 3 * D), lambda i: (0, 0, 0),      # biases: resident
                             pipeline_mode=pl.Buffered(1)),
            ],
            out_specs=pl.BlockSpec((tile, D), lambda i: (i, 0)),
        )
        dim_sem = ("parallel",)
    else:
        # Stream one layer of weights per grid step; carry activation in VMEM
        # scratch across the "arbitrary" layer axis (needed on v7x's 64 MiB VMEM).
        kernel = _make_streamed_kernel(D, nonlinearity)
        grid_spec = pltpu.PrefetchScalarGridSpec(
            num_scalar_prefetch=0,
            grid=(Np // tile, L),
            in_specs=[
                pl.BlockSpec((tile, D), lambda i, l: (i, 0)),
                pl.BlockSpec((1, D, 3 * D), lambda i, l: (l, 0, 0)),
                pl.BlockSpec((1, 1, 3 * D), lambda i, l: (l, 0, 0)),
            ],
            out_specs=pl.BlockSpec((tile, D), lambda i, l: (i, 0)),
            scratch_shapes=[pltpu.VMEM((tile, D), jnp.float32)],
        )
        dim_sem = ("parallel", "arbitrary")

    out = pl.pallas_call(
        kernel,
        out_shape=jax.ShapeDtypeStruct((Np, D), io_dtype),   # native-dtype I/O
        grid_spec=grid_spec,
        compiler_params=pltpu.CompilerParams(
            dimension_semantics=dim_sem,
            vmem_limit_bytes=vmem_limit,
        ),
    )(x, fused_w, fused_b)

    return out[:N].reshape(orig_shape)


# ----------------------------- params & reference ---------------------------

def init_highway_params(key, input_size, number_layers, matmul_dtype=MATMUL_DTYPE):
    """Mirrors torch.nn.Linear default init: U(-1/sqrt(D), 1/sqrt(D)) for W and b.
    Returns fused (L, D, 3D) weights / (L, 1, 3D) biases, plus an f32 weight copy
    for the pure-JAX reference."""
    D = input_size
    bound = 1.0 / math.sqrt(D)
    ws, bs = [], []
    k = key
    for _ in range(number_layers):
        k, kh, kl, kg, kbh, kbl, kbg = jax.random.split(k, 7)
        w_h = jax.random.uniform(kh, (D, D), jnp.float32, -bound, bound)
        w_l = jax.random.uniform(kl, (D, D), jnp.float32, -bound, bound)
        w_g = jax.random.uniform(kg, (D, D), jnp.float32, -bound, bound)
        b_h = jax.random.uniform(kbh, (D,), jnp.float32, -bound, bound)
        b_l = jax.random.uniform(kbl, (D,), jnp.float32, -bound, bound)
        b_g = jax.random.uniform(kbg, (D,), jnp.float32, -bound, bound)
        ws.append(jnp.concatenate([w_h, w_l, w_g], axis=1))       # (D, 3D)
        bs.append(jnp.concatenate([b_h, b_l, b_g])[None, :])      # (1, 3D)
    fused_w_f32 = jnp.stack(ws)                                   # (L, D, 3D)
    fused_b = jnp.stack(bs)                                       # (L, 1, 3D)
    return fused_w_f32.astype(matmul_dtype), fused_b, fused_w_f32


def highway_reference(inputs, fused_w_f32, fused_b, nonlinearity=jax.nn.relu):
    """Pure-JAX f32 reference matching the PyTorch forward."""
    D = inputs.shape[-1]
    y = inputs.astype(jnp.float32)
    for layer in range(fused_w_f32.shape[0]):
        z = jnp.dot(y, fused_w_f32[layer],
                    preferred_element_type=jnp.float32) + fused_b[layer]
        h = nonlinearity(z[..., 0 * D:1 * D])
        lin = z[..., 1 * D:2 * D]
        g = jax.nn.sigmoid(z[..., 2 * D:3 * D])
        y = g * h + (1.0 - g) * lin
    return y


# ----------------------------- main -----------------------------------------

if __name__ == "__main__":
    # TODO(synk): `nonlinearity` is a constructor argument in the PyTorch module;
    # here it is any JAX callable (ReLU used, matching typical usage).
    B, T, D = 2, 8, 128          # D a multiple of 128 keeps gate slices lane-aligned
    number_layers = 2

    root = jax.random.PRNGKey(0)
    k_param, k_x1, k_x2 = jax.random.split(root, 3)

    fused_w, fused_b, fused_w_f32 = init_highway_params(k_param, D, number_layers)

    # 1) f32 input, resident-weights path.
    x1 = jax.random.normal(k_x1, (B, T, D), jnp.float32)
    out1 = jax.block_until_ready(highway_forward(x1, fused_w, fused_b))
    ref1 = highway_reference(x1, fused_w_f32, fused_b)
    assert out1.shape == x1.shape and out1.dtype == x1.dtype
    assert bool(jnp.isfinite(out1).all())
    err1 = float(jnp.max(jnp.abs(out1.astype(jnp.float32) - ref1)))
    assert err1 <= 3e-2, f"resident path: max abs err {err1}"

    # 2) bf16 input: native-dtype I/O, plus row padding (N=15 rows -> 16).
    x2 = jax.random.normal(k_x2, (3, 5, D), jnp.float32).astype(jnp.bfloat16)
    out2 = jax.block_until_ready(highway_forward(x2, fused_w, fused_b))
    ref2 = highway_reference(x2.astype(jnp.float32), fused_w_f32, fused_b)
    assert out2.shape == x2.shape and out2.dtype == x2.dtype
    assert bool(jnp.isfinite(out2.astype(jnp.float32)).all())
    err2 = float(jnp.max(jnp.abs(out2.astype(jnp.float32) - ref2)))
    assert err2 <= 6e-2, f"bf16 I/O path: max abs err {err2}"

    # 3) Layer-streaming path (chosen automatically when all layers' weights
    #    would not fit ~1/3 of per-core VMEM, e.g. on v7x); forced here to
    #    exercise it at small shapes.
    out3 = jax.block_until_ready(
        highway_forward(x1, fused_w, fused_b, force_stream_layers=True))
    err3 = float(jnp.max(jnp.abs(out3.astype(jnp.float32) - ref1)))
    assert err3 <= 3e-2, f"streamed path: max abs err {err3}"

    print("KERNEL_OK")
</pallas_src>

<mosaic_0001>
module attributes {stable_mosaic.version = 11 : i64} {
  func.func @kernel(%arg0: i32, %arg1: memref<16x128xf32, #tpu.memory_space<vmem>>, %arg2: memref<2x128x384xbf16, #tpu.memory_space<vmem>>, %arg3: memref<2x1x384xf32, #tpu.memory_space<vmem>>, %arg4: memref<16x128xf32, #tpu.memory_space<vmem>>) attributes {dimension_semantics = [#tpu.dimension_semantics<parallel>], iteration_bounds = array<i64: 1>, scalar_prefetch = 0 : i64, scratch_operands = 0 : i64, tpu.core_type = #tpu.core_type<tc>, window_params = [{transform_indices = @transform_0, window_bounds = array<i64: 16, 128>}, {pipeline_mode = #tpu.pipeline_mode<synchronous>, transform_indices = @transform_1, window_bounds = array<i64: 2, 128, 384>}, {pipeline_mode = #tpu.pipeline_mode<synchronous>, transform_indices = @transform_2, window_bounds = array<i64: 2, 1, 384>}, {transform_indices = @transform_3, window_bounds = array<i64: 16, 128>}]} {
    %c0 = arith.constant 0 : index
    %c0_0 = arith.constant 0 : index
    %0 = vector.load %arg1[%c0, %c0_0] : memref<16x128xf32, #tpu.memory_space<vmem>>, vector<16x128xf32>
    %c0_1 = arith.constant 0 : index
    %c0_2 = arith.constant 0 : index
    %c0_3 = arith.constant 0 : index
    %1 = vector.load %arg2[%c0_1, %c0_2, %c0_3] : memref<2x128x384xbf16, #tpu.memory_space<vmem>>, vector<1x128x384xbf16>
    %2 = vector.shape_cast %1 : vector<1x128x384xbf16> to vector<128x384xbf16>
    %c0_4 = arith.constant 0 : index
    %c0_5 = arith.constant 0 : index
    %c0_6 = arith.constant 0 : index
    %3 = vector.load %arg3[%c0_4, %c0_5, %c0_6] : memref<2x1x384xf32, #tpu.memory_space<vmem>>, vector<1x1x384xf32>
    %4 = vector.shape_cast %3 : vector<1x1x384xf32> to vector<1x384xf32>
    %5 = arith.truncf %0 : vector<16x128xf32> to vector<16x128xbf16>
    %cst = arith.constant dense<0.000000e+00> : vector<16x384xf32>
    %6 = tpu.matmul %5, %2, %cst {dimension_numbers = #tpu.dot_dimension_numbers<[1], [0], [0], [1], [0, 0, 1, 1], [], []>} : vector<16x128xbf16>, vector<128x384xbf16>, vector<16x384xf32> -> vector<16x384xf32>
    %7 = vector.broadcast %4 : vector<1x384xf32> to vector<16x384xf32>
    %8 = arith.addf %6, %7 : vector<16x384xf32>
    %9 = vector.extract_strided_slice %8 {offsets = [0, 0], sizes = [16, 128], strides = [1, 1]} : vector<16x384xf32> to vector<16x128xf32>
    %cst_7 = arith.constant 0.000000e+00 : f32
    %10 = vector.broadcast %cst_7 : f32 to vector<16x128xf32>
    %11 = arith.maximumf %9, %10 : vector<16x128xf32>
    %12 = vector.extract_strided_slice %8 {offsets = [0, 128], sizes = [16, 128], strides = [1, 1]} : vector<16x384xf32> to vector<16x128xf32>
    %13 = vector.extract_strided_slice %8 {offsets = [0, 256], sizes = [16, 128], strides = [1, 1]} : vector<16x384xf32> to vector<16x128xf32>
    %14 = arith.negf %13 : vector<16x128xf32>
    %15 = math.exp %14 : vector<16x128xf32>
    %cst_8 = arith.constant 1.000000e+00 : f32
    %16 = vector.broadcast %cst_8 : f32 to vector<16x128xf32>
    %17 = arith.addf %16, %15 : vector<16x128xf32>
    %18 = arith.divf %16, %17 : vector<16x128xf32>
    %19 = arith.subf %11, %12 : vector<16x128xf32>
    %20 = arith.mulf %18, %19 : vector<16x128xf32>
    %21 = arith.addf %12, %20 : vector<16x128xf32>
    %c1 = arith.constant 1 : index
    %c0_9 = arith.constant 0 : index
    %c0_10 = arith.constant 0 : index
    %22 = vector.load %arg2[%c1, %c0_9, %c0_10] : memref<2x128x384xbf16, #tpu.memory_space<vmem>>, vector<1x128x384xbf16>
    %23 = vector.shape_cast %22 : vector<1x128x384xbf16> to vector<128x384xbf16>
    %c1_11 = arith.constant 1 : index
    %c0_12 = arith.constant 0 : index
    %c0_13 = arith.constant 0 : index
    %24 = vector.load %arg3[%c1_11, %c0_12, %c0_13] : memref<2x1x384xf32, #tpu.memory_space<vmem>>, vector<1x1x384xf32>
    %25 = vector.shape_cast %24 : vector<1x1x384xf32> to vector<1x384xf32>
    %26 = arith.truncf %21 : vector<16x128xf32> to vector<16x128xbf16>
    %cst_14 = arith.constant dense<0.000000e+00> : vector<16x384xf32>
    %27 = tpu.matmul %26, %23, %cst_14 {dimension_numbers = #tpu.dot_dimension_numbers<[1], [0], [0], [1], [0, 0, 1, 1], [], []>} : vector<16x128xbf16>, vector<128x384xbf16>, vector<16x384xf32> -> vector<16x384xf32>
    %28 = vector.broadcast %25 : vector<1x384xf32> to vector<16x384xf32>
    %29 = arith.addf %27, %28 : vector<16x384xf32>
    %30 = vector.extract_strided_slice %29 {offsets = [0, 0], sizes = [16, 128], strides = [1, 1]} : vector<16x384xf32> to vector<16x128xf32>
    %cst_15 = arith.constant 0.000000e+00 : f32
    %31 = vector.broadcast %cst_15 : f32 to vector<16x128xf32>
    %32 = arith.maximumf %30, %31 : vector<16x128xf32>
    %33 = vector.extract_strided_slice %29 {offsets = [0, 128], sizes = [16, 128], strides = [1, 1]} : vector<16x384xf32> to vector<16x128xf32>
    %34 = vector.extract_strided_slice %29 {offsets = [0, 256], sizes = [16, 128], strides = [1, 1]} : vector<16x384xf32> to vector<16x128xf32>
    %35 = arith.negf %34 : vector<16x128xf32>
    %36 = math.exp %35 : vector<16x128xf32>
    %cst_16 = arith.constant 1.000000e+00 : f32
    %37 = vector.broadcast %cst_16 : f32 to vector<16x128xf32>
    %38 = arith.addf %37, %36 : vector<16x128xf32>
    %39 = arith.divf %37, %38 : vector<16x128xf32>
    %40 = arith.subf %32, %33 : vector<16x128xf32>
    %41 = arith.mulf %39, %40 : vector<16x128xf32>
    %42 = arith.addf %33, %41 : vector<16x128xf32>
    %c0_17 = arith.constant 0 : index
    %c0_18 = arith.constant 0 : index
    %43 = vector.load %arg4[%c0_17, %c0_18] : memref<16x128xf32, #tpu.memory_space<vmem>>, vector<16x128xf32>
    tpu.vector_store %arg4[%c0_17, %c0_18], %42 {strides = array<i32>} : memref<16x128xf32, #tpu.memory_space<vmem>>, vector<16x128xf32>,
    return
  }
  func.func @transform_0(%arg0: i32) -> (i32, i32) {
    %c0_i32 = arith.constant 0 : i32
    %c0_i32_0 = arith.constant 0 : i32
    return %arg0, %c0_i32 : i32, i32
  }
  func.func @transform_1(%arg0: i32) -> (i32, i32, i32) {
    %c0_i32 = arith.constant 0 : i32
    %c0_i32_0 = arith.constant 0 : i32
    %c0_i32_1 = arith.constant 0 : i32
    %c0_i32_2 = arith.constant 0 : i32
    return %c0_i32, %c0_i32_0, %c0_i32_1 : i32, i32, i32
  }
  func.func @transform_2(%arg0: i32) -> (i32, i32, i32) {
    %c0_i32 = arith.constant 0 : i32
    %c0_i32_0 = arith.constant 0 : i32
    %c0_i32_1 = arith.constant 0 : i32
    %c0_i32_2 = arith.constant 0 : i32
    return %c0_i32, %c0_i32_0, %c0_i32_1 : i32, i32, i32
  }
  func.func @transform_3(%arg0: i32) -> (i32, i32) {
    %c0_i32 = arith.constant 0 : i32
    %c0_i32_0 = arith.constant 0 : i32
    return %arg0, %c0_i32 : i32, i32
  }
}

</mosaic_0001>

<bundles_post_ra>
// kernel: tpu_custom_call.1
= control target key start
LH: loop header
LB: loop body
LE: loop exit
PB: predicated region body
PF: predicated region fallthrough
CT: control target
= control target key end

     0   :  { %8 = vsyncpa [#allocation3], 0  ;;  %s1012_s0 = inlined_call_operand.hbm [shape: f32[16,128], index: 0, kind: input, shape index: {}]   ;;  %s1013_s1 = inlined_call_operand.hbm [shape: bf16[2,128,384], index: 1, kind: input, shape index: {}]   ;;  %s1014_s2 = inlined_call_operand.hbm [shape: f32[2,1,384], index: 2, kind: input, shape index: {}]   ;;  %s1015_s3 = inlined_call_operand.hbm [shape: f32[16,128], index: 3, kind: output, shape index: {}]  }
   0x1   :  { %9 = vsyncpa [#allocation6], 0 }
   0x2   :  { %10 = vsyncpa [#allocation4], 0  ;;  %s934_s12 = smov [#allocation5]  }
   0x3   :  { %s28_s13 = sshll.u32 %s934_s12, 4  ;;  %s29_s13 = int_to_ptr.vmem [resolvable:$true] %s28_s13 }
   0x4   :  { %s856_s14 = scalar_lea.vmem %s29_s13, 6144  ;;  %p861_p1 = scmp.lt.s32.totalorder %s29_s13, %s29_s13 }
   0x5   :  { %p857_p0 = scmp.ne.s32.totalorder %s29_s13, %s856_s14  ;;  %p862_p2 = scmp.lt.s32.totalorder %s856_s14, %s856_s14 }
   0x7   :  { %p863_p3 = por %p862_p2, %p861_p1 }
   0x9   :  { %p864_p4 = pnand %p863_p3, %p857_p0 }
   0xb   :  { %867 = shalt.err (!%p864_p4)
}
   0xc   :  { %s935_s15 = smov 192   ;;  %s936_s16 = smov 12  }
   0xd   :  { %34 = dma.hbm_to_vmem [thread:$0]  %s1013_s1, 6144, %s29_s13, [#allocation6], %s935_s15, %s935_s15, %s936_s16  }
   0xe   :  { %s937_s19 = smov [#allocation2]  }
   0xf   :  { %s16_s20 = sshll.u32 %s937_s19, 4  ;;  %s17_s20 = int_to_ptr.vmem [resolvable:$true] %s16_s20 }
  0x10   :  { %s876_s21 = scalar_lea.vmem %s17_s20, 256  ;;  %p881_p6 = scmp.lt.s32.totalorder %s17_s20, %s17_s20 }
  0x11   :  { %p877_p5 = scmp.ne.s32.totalorder %s17_s20, %s876_s21  ;;  %p882_p7 = scmp.lt.s32.totalorder %s876_s21, %s876_s21 }
  0x13   :  { %p883_p8 = por %p882_p7, %p881_p6 }
  0x15   :  { %p884_p9 = pnand %p883_p8, %p877_p5 }
  0x17   :  { %887 = shalt.err (!%p884_p9)
}
  0x18   :  { %s938_s22 = smov 128   ;;  %s939_s23 = smov 8  }
  0x19   :  { %22 = dma.hbm_to_vmem [thread:$0]  %s1012_s0, 256, %s17_s20, [#allocation3], %s938_s22, %s938_s22, %s939_s23  }
  0x1a   :  { %s940_s1 = smov [#allocation7]  }
  0x1b   :  { %s40_s26 = sshll.u32 %s940_s1, 4  ;;  %s41_s26 = int_to_ptr.vmem [resolvable:$true] %s40_s26 }
  0x1c   :  { %s896_s27 = scalar_lea.vmem %s41_s26, 96  ;;  %p901_p11 = scmp.lt.s32.totalorder %s41_s26, %s41_s26 }
  0x1d   :  { %p897_p10 = scmp.ne.s32.totalorder %s41_s26, %s896_s27  ;;  %p902_p12 = scmp.lt.s32.totalorder %s896_s27, %s896_s27 }
  0x1f   :  { %p903_p13 = por %p902_p12, %p901_p11 }
  0x21   :  { %p904_p0 = pnand %p903_p13, %p897_p10 }
  0x23   :  { %907 = shalt.err (!%p904_p0)
}
  0x24   :  { %s941_s28 = smov 48   ;;  %s942_s29 = smov 3  }
  0x25   :  { %46 = dma.hbm_to_vmem [thread:$0]  %s1014_s2, 96, %s41_s26, [#allocation6], %s941_s28, %s941_s28, %s942_s29  }
  0x26   :  { %928 = dma.done.wait [#allocation3], 256  }
  0x27   :  { %929 = vsyncadd [#allocation3], 4294967040 }
  0x28   :  { %930 = dma.done.wait [#allocation6], 6240  }
  0x29   :  { %931 = vsyncadd [#allocation6], 4294961056  ;;  %v943_v0 = vmov 0.0   ;;  %vm944_vm0 = vmmov 0   ;;  %v945_v1 = vmov 0   ;;  %v57_v22 = vld [vmem:[#allocation2] sm:$0xff]  ;;  %v94_v53 = vlaneseq }
  0x2a   :  { %715 = vmatprep.subr.bf16.mxu1 %v943_v0  ;;  %731 = vmatprep.mubr.msk.bf16.mxu1 %vm944_vm0, %v943_v0  ;;  %v768_v2 = vld [vmem:[#allocation5 + $0xb0] ss:$12 sps:$4 sm:$0xff]   ;;  %v769_v3 = vld [vmem:[#allocation5 + $0x98] ss:$12 sps:$4 sm:$0xff]   ;;  %v770_v4 = vld [vmem:[#allocation5 + $0x80] ss:$12 sps:$4 sm:$0xff]  }
  0x2b   :  { %269 = vmatprep.mubr.bf16.mxu0 %v945_v1  ;;  %716 = vmatpush3.bf16.msra.mxu1 %v768_v2  ;;  %v774_v5 = vld [vmem:[#allocation5 + $0xac] ss:$12 sps:$4 sm:$0xff]   ;;  %v776_v6 = vld [vmem:[#allocation5 + $0xa8] ss:$12 sps:$4 sm:$0xff]   ;;  %v780_v8 = vld [vmem:[#allocation5 + $0x90] ss:$12 sps:$4 sm:$0xff]  }
  0x2c   :  { %717 = vmatprep.subr.bf16.mxu1 %v943_v0  ;;  %237 = vmatprep.subr.bf16.mxu0 %v774_v5  ;;  %v778_v7 = vld [vmem:[#allocation5 + $0x94] ss:$12 sps:$4 sm:$0xff]   ;;  %v782_v10 = vld [vmem:[#allocation5 + $0x7c] ss:$12 sps:$4 sm:$0xff]   ;;  %v784_v12 = vld [vmem:[#allocation5 + $0x78] ss:$12 sps:$4 sm:$0xff]  }
  0x2d   :  { %238 = vmatpush1.bf16.msra.mxu0 %v776_v6  ;;  %v771_v9 = vld [vmem:[#allocation5 + $0x68] ss:$12 sps:$4 sm:$0xff]   ;;  %v772_v11 = vld [vmem:[#allocation5 + $0x50] ss:$12 sps:$4 sm:$0xff]   ;;  %v773_v14 = vld [vmem:[#allocation5 + $0x38] ss:$12 sps:$4 sm:$0xff]  }
  0x2e   :  { %239 = vmatprep.subr.bf16.mxu0 %v778_v7  ;;  %v785_v13 = vld [vmem:[#allocation5 + $0x64] ss:$12 sps:$4 sm:$0xff]   ;;  %v787_v15 = vld [vmem:[#allocation5 + $0x60] ss:$12 sps:$4 sm:$0xff]   ;;  %v790_v17 = vld [vmem:[#allocation5 + $0x48] ss:$12 sps:$4 sm:$0xff]  }
  0x2f   :  { %718 = vmatpush3.bf16.msra.mxu1 %v769_v3  ;;  %v788_v16 = vld [vmem:[#allocation5 + $0x4c] ss:$12 sps:$4 sm:$0xff]   ;;  %v791_v19 = vld [vmem:[#allocation5 + $0x34] ss:$12 sps:$4 sm:$0xff]   ;;  %v793_v20 = vld [vmem:[#allocation5 + $0x30] ss:$12 sps:$4 sm:$0xff]  }
  0x30   :  { %719 = vmatprep.subr.bf16.mxu1 %v943_v0  ;;  %v777_v18 = vld [vmem:[#allocation5 + $0x20] ss:$12 sps:$4 sm:$0xff]   ;;  %v781_v21 = vld [vmem:[#allocation5 + $0x8] ss:$12 sps:$4 sm:$0xff]   ;;  %v58_v23 = vld [vmem:[#allocation2 + $0x8] sm:$0xff]  ;;  %v1001_v54 = vshrl.u32 %v94_v53, 7 }
  0x31   :  { %240 = vmatpush1.bf16.msra.mxu0 %v780_v8  ;;  %v794_v24 = vld [vmem:[#allocation5 + $0x1c] ss:$12 sps:$4 sm:$0xff]   ;;  %v796_v25 = vld [vmem:[#allocation5 + $0x18] ss:$12 sps:$4 sm:$0xff]   ;;  %v92_v26 = vpack.c.bf16 %v58_v23, %v57_v22  ;;  %v799_v28 = vld [vmem:[#allocation5] ss:$12 sps:$4 sm:$0xff]  }
  0x32   :  { %241 = vmatprep.subr.bf16.mxu0 %v782_v10  ;;  %v797_v27 = vld [vmem:[#allocation5 + $0x4] ss:$12 sps:$4 sm:$0xff]   ;;  %v802_v29 = vld [vmem:[#allocation5 + $0x16c] ss:$12 sps:$4 sm:$0xff]   ;;  %v800_v30 = vld [vmem:[#allocation5 + $0x168] ss:$12 sps:$4 sm:$0xff]  }
  0x33   :  { %720 = vmatpush3.bf16.msra.mxu1 %v770_v4  ;;  %v803_v31 = vld [vmem:[#allocation5 + $0x170] ss:$12 sps:$4 sm:$0xff]   ;;  %v806_v32 = vld [vmem:[#allocation5 + $0x154] ss:$12 sps:$4 sm:$0xff]   ;;  %v807_v34 = vld [vmem:[#allocation5 + $0x158] ss:$12 sps:$4 sm:$0xff]  }
  0x34   :  { %721 = vmatprep.subr.bf16.mxu1 %v943_v0  ;;  %v804_v33 = vld [vmem:[#allocation5 + $0x150] ss:$12 sps:$4 sm:$0xff]   ;;  %v808_v36 = vld [vmem:[#allocation5 + $0x138] ss:$12 sps:$4 sm:$0xff]   ;;  %v811_v37 = vld [vmem:[#allocation5 + $0x140] ss:$12 sps:$4 sm:$0xff]  }
  0x35   :  { %242 = vmatpush1.bf16.msra.mxu0 %v784_v12  ;;  %v810_v35 = vld [vmem:[#allocation5 + $0x13c] ss:$12 sps:$4 sm:$0xff]   ;;  %v814_v38 = vld [vmem:[#allocation5 + $0x124] ss:$12 sps:$4 sm:$0xff]   ;;  %v812_v39 = vld [vmem:[#allocation5 + $0x120] ss:$12 sps:$4 sm:$0xff]  }
  0x36   :  { %243 = vmatprep.subr.bf16.mxu0 %v785_v13  ;;  %v815_v40 = vld [vmem:[#allocation5 + $0x128] ss:$12 sps:$4 sm:$0xff]   ;;  %v818_v41 = vld [vmem:[#allocation5 + $0x10c] ss:$12 sps:$4 sm:$0xff]   ;;  %v819_v43 = vld [vmem:[#allocation5 + $0x110] ss:$12 sps:$4 sm:$0xff]  }
  0x37   :  { %722 = vmatpush3.bf16.msra.mxu1 %v771_v9  ;;  %v816_v42 = vld [vmem:[#allocation5 + $0x108] ss:$12 sps:$4 sm:$0xff]   ;;  %v820_v45 = vld [vmem:[#allocation5 + $0xf0] ss:$12 sps:$4 sm:$0xff]   ;;  %v823_v46 = vld [vmem:[#allocation5 + $0xf8] ss:$12 sps:$4 sm:$0xff]  }
  0x38   :  { %723 = vmatprep.subr.bf16.mxu1 %v943_v0  ;;  %v822_v44 = vld [vmem:[#allocation5 + $0xf4] ss:$12 sps:$4 sm:$0xff]   ;;  %v826_v47 = vld [vmem:[#allocation5 + $0xdc] ss:$12 sps:$4 sm:$0xff]   ;;  %v824_v48 = vld [vmem:[#allocation5 + $0xd8] ss:$12 sps:$4 sm:$0xff]  }
  0x39   :  { %244 = vmatpush1.bf16.msra.mxu0 %v787_v15  ;;  %v827_v49 = vld [vmem:[#allocation5 + $0xe0] ss:$12 sps:$4 sm:$0xff]   ;;  %v830_v50 = vld [vmem:[#allocation5 + $0xc4] ss:$12 sps:$4 sm:$0xff]   ;;  %v831_v52 = vld [vmem:[#allocation5 + $0xc8] ss:$12 sps:$4 sm:$0xff]  }
  0x3a   :  { %245 = vmatprep.subr.bf16.mxu0 %v788_v16  ;;  %v828_v51 = vld [vmem:[#allocation5 + $0xc0] ss:$12 sps:$4 sm:$0xff]   ;;  %v104_v55 = vsub.s32 2, %v1001_v54  ;;  %v96_v5 = vsub.s32 0, %v1001_v54  ;;  %v100_v10 = vsub.s32 1, %v1001_v54  ;;  %s946_s0 = smov [#allocation8]  }
  0x3b   :  { %724 = vmatpush3.bf16.msra.mxu1 %v772_v11  ;;  %v91_v56 = vld [vmem:[#allocation7] sm:$0x7]  ;;  %s632_s2 = sshll.u32 %s946_s0, 4  ;;  %s633_s2 = int_to_ptr.vmem [resolvable:$true] %s632_s2 }
  0x3c   :  { %725 = vmatprep.subr.bf16.mxu1 %v943_v0  ;;  %v105_v57 = vrot.slane %v91_v56, %v104_v55  ;;  %v97_v9 = vrot.slane %v91_v56, %v96_v5  ;;  %v101_v13 = vrot.slane %v91_v56, %v100_v10  ;;  %s908_s5 = scalar_lea.vmem %s633_s2, 256  ;;  %p913_p2 = scmp.lt.s32.totalorder %s633_s2, %s633_s2 }
  0x3d   :  { %246 = vmatpush1.bf16.msra.mxu0 %v790_v17  ;;  %p909_p1 = scmp.ne.s32.totalorder %s633_s2, %s908_s5  ;;  %p914_p3 = scmp.lt.s32.totalorder %s908_s5, %s908_s5 }
  0x3e   :  { %247 = vmatprep.subr.bf16.mxu0 %v791_v19 }
  0x3f   :  { %726 = vmatpush3.bf16.msra.mxu1 %v773_v14  ;;  %p915_p4 = por %p914_p3, %p913_p2 }
  0x40   :  { %727 = vmatprep.subr.bf16.mxu1 %v943_v0 }
  0x41   :  { %248 = vmatpush1.bf16.msra.mxu0 %v793_v20  ;;  %p916_p5 = pnand %p915_p4, %p909_p1 }
  0x42   :  { %249 = vmatprep.subr.bf16.mxu0 %v794_v24 }
  0x43   :  { %728 = vmatpush3.bf16.msra.mxu1 %v777_v18 }
  0x44   :  { %729 = vmatprep.subr.bf16.mxu1 %v943_v0 }
  0x45   :  { %250 = vmatpush1.bf16.msra.mxu0 %v796_v25 }
  0x46   :  { %251 = vmatprep.subr.bf16.mxu0 %v797_v27 }
  0x47   :  { %730 = vmatpush3.bf16.msra.mxu1 %v781_v21 }
  0x48   :  { %735 = vmatprep.subr.bf16.mxu1 %v943_v0 }
  0x49   :  { %252 = vmatpush1.bf16.msra.mxu0 %v799_v28 }
  0x4a   :  { %732 = vmatmul.mubr.bf16.vlgmr.msra.gmra.mxu1 %v92_v26  ;;  %521 = vmatprep.subr.bf16.mxu0 %v802_v29  ;;  %v375_v29 = vld [vmem:[#allocation7 + $0x3] sm:$0x7] }
  0x4b   :  { %751 = vmatprep.mubr.msk.bf16.mxu1 %vm944_vm0, %v943_v0  ;;  %736 = vmatpush3.bf16.msra.mxu1 %v803_v31 }
  0x4c   :  { %270 = vmatmul.mubr.bf16.vlgmr.msra.gmra.mxu0 %v92_v26  ;;  %737 = vmatprep.subr.bf16.mxu1 %v943_v0 }
  0x4d   :  { %553 = vmatprep.mubr.bf16.mxu0 %v945_v1  ;;  %522 = vmatpush1.bf16.msra.mxu0 %v800_v30  ;;  %v389_v30 = vrot.slane %v375_v29, %v104_v55 }
  0x4e   :  { %523 = vmatprep.subr.bf16.mxu0 %v806_v32 }
  0x4f   :  { %738 = vmatpush3.bf16.msra.mxu1 %v807_v34 }
  0x50   :  { %739 = vmatprep.subr.bf16.mxu1 %v943_v0 }
  0x51   :  { %524 = vmatpush1.bf16.msra.mxu0 %v804_v33 }
  0x52   :  { %525 = vmatprep.subr.bf16.mxu0 %v810_v35 }
  0x53   :  { %740 = vmatpush3.bf16.msra.mxu1 %v811_v37 }
  0x54   :  { %741 = vmatprep.subr.bf16.mxu1 %v943_v0 }
  0x55   :  { %526 = vmatpush1.bf16.msra.mxu0 %v808_v36 }
  0x56   :  { %527 = vmatprep.subr.bf16.mxu0 %v814_v38 }
  0x57   :  { %742 = vmatpush3.bf16.msra.mxu1 %v815_v40 }
  0x58   :  { %743 = vmatprep.subr.bf16.mxu1 %v943_v0 }
  0x59   :  { %528 = vmatpush1.bf16.msra.mxu0 %v812_v39 }
  0x5a   :  { %529 = vmatprep.subr.bf16.mxu0 %v818_v41 }
  0x5b   :  { %744 = vmatpush3.bf16.msra.mxu1 %v819_v43 }
  0x5c   :  { %745 = vmatprep.subr.bf16.mxu1 %v943_v0 }
  0x5d   :  { %530 = vmatpush1.bf16.msra.mxu0 %v816_v42  ;;  %v381_v42 = vrot.slane %v375_v29, %v96_v5 }
  0x5e   :  { %531 = vmatprep.subr.bf16.mxu0 %v822_v44 }
  0x5f   :  { %746 = vmatpush3.bf16.msra.mxu1 %v823_v46 }
  0x60   :  { %747 = vmatprep.subr.bf16.mxu1 %v943_v0 }
  0x61   :  { %532 = vmatpush1.bf16.msra.mxu0 %v820_v45 }
  0x62   :  { %533 = vmatprep.subr.bf16.mxu0 %v826_v47  ;;  %v385_v47 = vrot.slane %v375_v29, %v100_v10 }
  0x63   :  { %748 = vmatpush3.bf16.msra.mxu1 %v827_v49 }
  0x64   :  { %749 = vmatprep.subr.bf16.mxu1 %v943_v0 }
  0x65   :  { %534 = vmatpush1.bf16.msra.mxu0 %v824_v48 }
  0x66   :  { %535 = vmatprep.subr.bf16.mxu0 %v830_v50 }
  0x67   :  { %750 = vmatpush3.bf16.msra.mxu1 %v831_v52 }
  0x69   :  { %536 = vmatpush1.bf16.msra.mxu0 %v828_v51 }
 0x10a   :  { %v314_v58 = vpop.f32.mrf.mxu1 }
 0x10b   :  { %v315_v59 = vadd.f32 %v314_v58, %v105_v57 }
 0x10c   :  { %v733_v60 = vpop.f32.mrf.mxu1  ;;  %v271_v3 = vpop.f32.mrf.mxu0 }
 0x10d   :  { %v669_v61 = vmul.f32 -1.442695, %v315_v59  ;;  %v272_v12 = vadd.f32 %v271_v3, %v97_v9 }
 0x10e   :  { %v317_v62 = vpop.f32.mrf.mxu1  ;;  %v273_v7 = vpop.f32.mrf.mxu0 }
 0x10f   :  { %832 = vpow2.f32 %v669_v61  ;;  %v318_v63 = vadd.f32 %v317_v62, %v105_v57  ;;  %v321_v16 = vmax.f32 %v272_v12, 0.0  ;;  %v274_v17 = vadd.f32 %v273_v7, %v101_v13 }
 0x110   :  { %v734_v0 = vpop.f32.mrf.mxu1  ;;  %v275_v11 = vpop.f32.mrf.mxu0 }
 0x111   :  { %v670_v1 = vmul.f32 -1.442695, %v318_v63  ;;  %v276_v14 = vadd.f32 %v275_v11, %v97_v9  ;;  %v335_v21 = vsub.f32 %v321_v16, %v274_v17 }
 0x112   :  { %v277_v15 = vpop.f32.mrf.mxu0 }
 0x113   :  { %834 = vpow2.f32 %v670_v1  ;;  %v322_v18 = vmax.f32 %v276_v14, 0.0  ;;  %v278_v19 = vadd.f32 %v277_v15, %v101_v13 }
 0x115   :  { %v336_v23 = vsub.f32 %v322_v18, %v278_v19 }
 0x11c   :  { %v833_v2 = vpop.eup %832 }
 0x11d   :  { %v329_v4 = vadd.f32 1.0, %v833_v2 }
 0x11f   :  { %836 = vrcp.f32 %v329_v4 }
 0x120   :  { %v835_v6 = vpop.eup %834 }
 0x121   :  { %v330_v8 = vadd.f32 1.0, %v835_v6 }
 0x123   :  { %838 = vrcp.f32 %v330_v8 }
 0x12c   :  { %v837_v20 = vpop.eup %836 }
 0x12d   :  { %v337_v22 = vmul.f32 %v837_v20, %v335_v21 }
 0x12f   :  { %v339_v26 = vadd.f32 %v337_v22, %v274_v17 }
 0x130   :  { %v839_v24 = vpop.eup %838 }
 0x131   :  { %v338_v25 = vmul.f32 %v839_v24, %v336_v23 }
 0x133   :  { %v340_v27 = vadd.f32 %v338_v25, %v278_v19 }
 0x135   :  { %v376_v28 = vpack.c.bf16 %v340_v27, %v339_v26 }
 0x137   :  { %554 = vmatmul.mubr.bf16.vlgmr.msra.gmra.mxu0 %v376_v28  ;;  %752 = vmatmul.mubr.bf16.vlgmr.msra.gmra.mxu1 %v376_v28 }
 0x1f7   :  { %v598_v31 = vpop.f32.mrf.mxu1  ;;  %v555_v40 = vpop.f32.mrf.mxu0 }
 0x1f8   :  { %v599_v32 = vadd.f32 %v598_v31, %v389_v30  ;;  %v556_v46 = vadd.f32 %v555_v40, %v381_v42 }
 0x1f9   :  { %v753_v33 = vpop.f32.mrf.mxu1  ;;  %v557_v44 = vpop.f32.mrf.mxu0 }
 0x1fa   :  { %v695_v34 = vmul.f32 -1.442695, %v599_v32  ;;  %v605_v49 = vmax.f32 %v556_v46, 0.0  ;;  %v558_v50 = vadd.f32 %v557_v44, %v385_v47 }
 0x1fb   :  { %v601_v35 = vpop.f32.mrf.mxu1  ;;  %v559_v48 = vpop.f32.mrf.mxu0 }
 0x1fc   :  { %840 = vpow2.f32 %v695_v34  ;;  %v602_v36 = vadd.f32 %v601_v35, %v389_v30  ;;  %v560_v51 = vadd.f32 %v559_v48, %v381_v42  ;;  %v619_v53 = vsub.f32 %v605_v49, %v558_v50 }
 0x1fd   :  { %v754_v37 = vpop.f32.mrf.mxu1  ;;  %v561_v52 = vpop.f32.mrf.mxu0 }
 0x1fe   :  { %v696_v38 = vmul.f32 -1.442695, %v602_v36  ;;  %v606_v54 = vmax.f32 %v560_v51, 0.0  ;;  %v562_v55 = vadd.f32 %v561_v52, %v385_v47 }
 0x200   :  { %842 = vpow2.f32 %v696_v38  ;;  %v620_v59 = vsub.f32 %v606_v54, %v562_v55 }
 0x209   :  { %v841_v39 = vpop.eup %840 }
 0x20a   :  { %v613_v41 = vadd.f32 1.0, %v841_v39 }
 0x20c   :  { %844 = vrcp.f32 %v613_v41 }
 0x20d   :  { %v843_v43 = vpop.eup %842 }
 0x20e   :  { %v614_v45 = vadd.f32 1.0, %v843_v43 }
 0x210   :  { %846 = vrcp.f32 %v614_v45 }
 0x219   :  { %v845_v56 = vpop.eup %844 }
 0x21a   :  { %v621_v57 = vmul.f32 %v845_v56, %v619_v53 }
 0x21c   :  { %v623_v58 = vadd.f32 %v621_v57, %v558_v50 }
 0x21d   :  { %v847_v60 = vpop.eup %846 }
 0x21e   :  { %625 = vst [vmem:[#allocation8] sm:$0xff] %v623_v58  ;;  %v622_v61 = vmul.f32 %v847_v60, %v620_v59 }
 0x220   :  { %v624_v62 = vadd.f32 %v622_v61, %v562_v55 }
 0x222   :  { %626 = vst [vmem:[#allocation8 + $0x8] sm:$0xff] %v624_v62 }
 0x223   :  { %919 = shalt.err (!%p916_p5)
}
 0x224   :  { %638 = dma.vmem_to_hbm [thread:$0]  %s633_s2, 256, %s1015_s3, [#allocation4], %s938_s22, %s938_s22, %s939_s23  }
 0x225   :  { %932 = dma.done.wait [#allocation4], 256  }
 0x226   :  { %933 = vsyncadd [#allocation4], 4294967040 }
 0x227   :  { %642 = vsyncpa [#allocation3], 1 }
 0x228   :  { %643 = vsyncpa [#allocation6], 1 }
 0x229   :  { %644 = vsyncpa [#allocation4], 1 }

</bundles_post_ra>
